<compile_context>
chip_gen: v6e
topology: v6e:2x2x1
jax: 0.10.0
libtpu: 0.0.40
codegen_flags: <defaults>
</compile_context>

<pallas_src>
import functools

import jax
import jax.numpy as jnp
from jax import lax
from jax.experimental import pallas as pl
from jax.experimental.pallas import tpu as pltpu


_EPS = 1e-5                                  # F.batch_norm default eps
_VMEM_LIMIT = 48 * 1024 * 1024               # explicit scoped-VMEM cap (all gens)
_TARGET_BLOCK_BYTES = 4 * 1024 * 1024        # ~4 MiB blocks -> ~85% HBM roofline
_FUSED_MAX_HW = 128 * 1024                   # one-pass path up to HW = 131072
# TODO(synk): on v5e/v6e (128 MiB VMEM) the fused cutoff could be pushed to
# ~256-512K HW; kept at a v7x-safe value since the generation is not queried.


def _sublane(dtype):
    # second-to-last block dim multiple per dtype packing (f32:8, bf16:16, i8:32)
    return {4: 8, 2: 16, 1: 32}.get(jnp.dtype(dtype).itemsize, 8)


# --------------------- fused single-pass kernel (HW <= cutoff) ----------------

def _adain_fused_kernel(x_ref, w_ref, b_ref, o_ref, *, inv_n):
    # x_ref/o_ref: (TR, HW) native dtype; w_ref/b_ref: (TR, 1) f32
    x = x_ref[...].astype(jnp.float32)
    mean = jnp.sum(x, axis=1, keepdims=True) * inv_n
    # biased variance via E[x^2] - mean^2 (clamped). Avoids a centered
    # full-tile temporary; fine for typical activation statistics.
    var = jnp.maximum(jnp.sum(x * x, axis=1, keepdims=True) * inv_n - mean * mean,
                      0.0)
    scale = lax.rsqrt(var + _EPS) * w_ref[...]
    shift = b_ref[...] - mean * scale
    o_ref[...] = (x * scale + shift).astype(o_ref.dtype)


def _adain_fused(x2, w2, b2):
    R, HW = x2.shape
    sub = _sublane(x2.dtype)
    itemsize = jnp.dtype(x2.dtype).itemsize
    if R <= sub:
        tr = R                                            # block = full row dim
    else:
        rows = max(sub, (_TARGET_BLOCK_BYTES // max(1, HW * itemsize)) // sub * sub)
        tr = min(rows, (R // sub) * sub)                  # multiple of sublane
    return pl.pallas_call(
        functools.partial(_adain_fused_kernel, inv_n=1.0 / float(HW)),
        out_shape=jax.ShapeDtypeStruct((R, HW), x2.dtype),
        grid=(pl.cdiv(R, tr),),                           # padded tail rows are
        in_specs=[                                        # independent & dropped
            pl.BlockSpec((tr, HW), lambda r: (r, 0)),
            pl.BlockSpec((tr, 1), lambda r: (r, 0)),
            pl.BlockSpec((tr, 1), lambda r: (r, 0)),
        ],
        out_specs=pl.BlockSpec((tr, HW), lambda r: (r, 0)),
        compiler_params=pltpu.CompilerParams(
            dimension_semantics=("parallel",),
            vmem_limit_bytes=_VMEM_LIMIT),
    )(x2, w2, b2)


# ------------------ tiled two-pass path (large HW) ------------------------

def _stats_kernel(x_ref, w_ref, b_ref, scale_ref, shift_ref, sum_ref, sq_ref,
                  *, n_valid, tc, mask_tail):
    # Grid axis 1 (columns) is the reduction axis; accumulate in VMEM scratch.
    c = pl.program_id(1)

    @pl.when(c == 0)
    def _():
        sum_ref[...] = jnp.zeros_like(sum_ref)
        sq_ref[...] = jnp.zeros_like(sq_ref)

    x = x_ref[...].astype(jnp.float32)
    if mask_tail:  # static: only emitted when HW % tc != 0
        col = lax.broadcasted_iota(jnp.int32, x.shape, 1) + c * tc
        x = jnp.where(col < n_valid, x, 0.0)
    sum_ref[...] += jnp.sum(x, axis=1, keepdims=True)
    sq_ref[...] += jnp.sum(x * x, axis=1, keepdims=True)

    @pl.when(c == pl.num_programs(1) - 1)
    def _():
        inv_n = 1.0 / float(n_valid)
        mean = sum_ref[...] * inv_n
        var = jnp.maximum(sq_ref[...] * inv_n - mean * mean, 0.0)
        scale = lax.rsqrt(var + _EPS) * w_ref[...]
        scale_ref[...] = scale
        shift_ref[...] = b_ref[...] - mean * scale


def _apply_kernel(x_ref, scale_ref, shift_ref, o_ref):
    x = x_ref[...].astype(jnp.float32)
    o_ref[...] = (x * scale_ref[...] + shift_ref[...]).astype(o_ref.dtype)


def _adain_tiled(x2, w2, b2):
    R, HW = x2.shape
    sub = _sublane(x2.dtype)
    itemsize = jnp.dtype(x2.dtype).itemsize

    # Row tile: up to 64 rows (sublane multiple); column tile: ~4 MiB blocks.
    tr = R if R <= sub else min(max(sub, 64 // sub * sub), (R // sub) * sub)
    tc = max(128, (_TARGET_BLOCK_BYTES // (tr * itemsize)) // 128 * 128)
    tc = min(tc, max(128, HW))
    nrb, ncb = pl.cdiv(R, tr), pl.cdiv(HW, tc)
    mask_tail = (HW % tc) != 0

    scale, shift = pl.pallas_call(
        functools.partial(_stats_kernel, n_valid=HW, tc=tc, mask_tail=mask_tail),
        out_shape=(jax.ShapeDtypeStruct((R, 1), jnp.float32),
                   jax.ShapeDtypeStruct((R, 1), jnp.float32)),
        grid=(nrb, ncb),
        in_specs=[pl.BlockSpec((tr, tc), lambda r, c: (r, c)),
                  pl.BlockSpec((tr, 1), lambda r, c: (r, 0)),
                  pl.BlockSpec((tr, 1), lambda r, c: (r, 0))],
        out_specs=(pl.BlockSpec((tr, 1), lambda r, c: (r, 0)),
                   pl.BlockSpec((tr, 1), lambda r, c: (r, 0))),
        scratch_shapes=[pltpu.VMEM((tr, 1), jnp.float32),
                        pltpu.VMEM((tr, 1), jnp.float32)],
        compiler_params=pltpu.CompilerParams(
            dimension_semantics=("parallel", "arbitrary"),
            vmem_limit_bytes=_VMEM_LIMIT),
    )(x2, w2, b2)

    out = pl.pallas_call(
        _apply_kernel,
        out_shape=jax.ShapeDtypeStruct((R, HW), x2.dtype),
        grid=(nrb, ncb),
        in_specs=[pl.BlockSpec((tr, tc), lambda r, c: (r, c)),
                  pl.BlockSpec((tr, 1), lambda r, c: (r, 0)),
                  pl.BlockSpec((tr, 1), lambda r, c: (r, 0))],
        out_specs=pl.BlockSpec((tr, tc), lambda r, c: (r, c)),
        compiler_params=pltpu.CompilerParams(
            dimension_semantics=("parallel", "parallel"),
            vmem_limit_bytes=_VMEM_LIMIT),
    )(x2, scale, shift)
    return out


# ------------------------------ public wrapper -----------------------------

def adaptive_instance_norm_2d(x, weight, bias):
    """AdaptiveInstanceNorm2d.forward: x (B,C,H,W); weight/bias with B*C elems."""
    B, C, H, W = x.shape
    R, HW = B * C, H * W

    x2 = x.reshape(R, HW)                                  # metadata-only reshape
    w2 = weight.reshape(R, 1).astype(jnp.float32)          # tiny per-row params
    b2 = bias.reshape(R, 1).astype(jnp.float32)

    if HW <= _FUSED_MAX_HW:
        out = _adain_fused(x2, w2, b2)
    else:
        out = _adain_tiled(x2, w2, b2)
    return out.reshape(B, C, H, W)


# --------------------------------- demo ------------------------------------

if __name__ == "__main__":
    key = jax.random.PRNGKey(0)
    kx, kw, kb = jax.random.split(key, 3)
    B, C, H, W = 2, 4, 16, 16

    x = jax.random.normal(kx, (B, C, H, W), jnp.float32)
    # In the PyTorch module weight/bias are assigned externally (AdaIN params),
    # one scale/shift per (batch, channel) instance.
    weight = 1.0 + 0.5 * jax.random.normal(kw, (B * C,), jnp.float32)
    bias = 0.1 * jax.random.normal(kb, (B * C,), jnp.float32)

    out = jax.jit(adaptive_instance_norm_2d)(x, weight, bias)
    jax.block_until_ready(out)

    # Reference: F.batch_norm on (1, B*C, H, W), training=True, eps=1e-5.
    xr = x.reshape(1, B * C, H, W)
    mean = xr.mean(axis=(0, 2, 3), keepdims=True)
    var = xr.var(axis=(0, 2, 3), keepdims=True)            # biased variance
    ref = (xr - mean) * jax.lax.rsqrt(var + _EPS)
    ref = ref * weight.reshape(1, -1, 1, 1) + bias.reshape(1, -1, 1, 1)
    ref = ref.reshape(B, C, H, W)

    assert jnp.allclose(out, ref, atol=1e-4, rtol=1e-4), \
        float(jnp.max(jnp.abs(out - ref)))
    print("KERNEL_OK")
</pallas_src>

<mosaic_0001>
module attributes {stable_mosaic.version = 11 : i64} {
  func.func @_adain_fused_kernel(%arg0: i32, %arg1: memref<8x256xf32, #tpu.memory_space<vmem>>, %arg2: memref<8x1xf32, #tpu.memory_space<vmem>>, %arg3: memref<8x1xf32, #tpu.memory_space<vmem>>, %arg4: memref<8x256xf32, #tpu.memory_space<vmem>>) attributes {dimension_semantics = [#tpu.dimension_semantics<parallel>], iteration_bounds = array<i64: 1>, scalar_prefetch = 0 : i64, scratch_operands = 0 : i64, tpu.core_type = #tpu.core_type<tc>, window_params = [{transform_indices = @transform_0, window_bounds = array<i64: 8, 256>}, {transform_indices = @transform_1, window_bounds = array<i64: 8, 1>}, {transform_indices = @transform_2, window_bounds = array<i64: 8, 1>}, {transform_indices = @transform_3, window_bounds = array<i64: 8, 256>}]} {
    %c0 = arith.constant 0 : index
    %c0_0 = arith.constant 0 : index
    %0 = vector.load %arg1[%c0, %c0_0] : memref<8x256xf32, #tpu.memory_space<vmem>>, vector<8x256xf32>
    %cst = arith.constant dense<0.000000e+00> : vector<8xf32>
    %1 = vector.multi_reduction <add>, %0, %cst [1] : vector<8x256xf32> to vector<8xf32>
    %2 = vector.shape_cast %1 : vector<8xf32> to vector<8x1xf32>
    %cst_1 = arith.constant 3.906250e-03 : f32
    %3 = vector.broadcast %cst_1 : f32 to vector<8x1xf32>
    %4 = arith.mulf %2, %3 : vector<8x1xf32>
    %5 = arith.mulf %0, %0 : vector<8x256xf32>
    %cst_2 = arith.constant dense<0.000000e+00> : vector<8xf32>
    %6 = vector.multi_reduction <add>, %5, %cst_2 [1] : vector<8x256xf32> to vector<8xf32>
    %7 = vector.shape_cast %6 : vector<8xf32> to vector<8x1xf32>
    %cst_3 = arith.constant 3.906250e-03 : f32
    %8 = vector.broadcast %cst_3 : f32 to vector<8x1xf32>
    %9 = arith.mulf %7, %8 : vector<8x1xf32>
    %10 = arith.mulf %4, %4 : vector<8x1xf32>
    %11 = arith.subf %9, %10 : vector<8x1xf32>
    %cst_4 = arith.constant 0.000000e+00 : f32
    %12 = vector.broadcast %cst_4 : f32 to vector<8x1xf32>
    %13 = arith.maximumf %11, %12 : vector<8x1xf32>
    %cst_5 = arith.constant 9.99999974E-6 : f32
    %14 = vector.broadcast %cst_5 : f32 to vector<8x1xf32>
    %15 = arith.addf %13, %14 : vector<8x1xf32>
    %16 = math.rsqrt %15 : vector<8x1xf32>
    %c0_6 = arith.constant 0 : index
    %c0_7 = arith.constant 0 : index
    %17 = vector.load %arg2[%c0_6, %c0_7] : memref<8x1xf32, #tpu.memory_space<vmem>>, vector<8x1xf32>
    %18 = arith.mulf %16, %17 : vector<8x1xf32>
    %c0_8 = arith.constant 0 : index
    %c0_9 = arith.constant 0 : index
    %19 = vector.load %arg3[%c0_8, %c0_9] : memref<8x1xf32, #tpu.memory_space<vmem>>, vector<8x1xf32>
    %20 = arith.mulf %4, %18 : vector<8x1xf32>
    %21 = arith.subf %19, %20 : vector<8x1xf32>
    %22 = vector.broadcast %18 : vector<8x1xf32> to vector<8x256xf32>
    %23 = arith.mulf %0, %22 : vector<8x256xf32>
    %24 = vector.broadcast %21 : vector<8x1xf32> to vector<8x256xf32>
    %25 = arith.addf %23, %24 : vector<8x256xf32>
    %c0_10 = arith.constant 0 : index
    %c0_11 = arith.constant 0 : index
    %26 = vector.load %arg4[%c0_10, %c0_11] : memref<8x256xf32, #tpu.memory_space<vmem>>, vector<8x256xf32>
    tpu.vector_store %arg4[%c0_10, %c0_11], %25 {strides = array<i32>} : memref<8x256xf32, #tpu.memory_space<vmem>>, vector<8x256xf32>,
    return
  }
  func.func @transform_0(%arg0: i32) -> (i32, i32) {
    %c0_i32 = arith.constant 0 : i32
    %c0_i32_0 = arith.constant 0 : i32
    return %arg0, %c0_i32 : i32, i32
  }
  func.func @transform_1(%arg0: i32) -> (i32, i32) {
    %c0_i32 = arith.constant 0 : i32
    %c0_i32_0 = arith.constant 0 : i32
    return %arg0, %c0_i32 : i32, i32
  }
  func.func @transform_2(%arg0: i32) -> (i32, i32) {
    %c0_i32 = arith.constant 0 : i32
    %c0_i32_0 = arith.constant 0 : i32
    return %arg0, %c0_i32 : i32, i32
  }
  func.func @transform_3(%arg0: i32) -> (i32, i32) {
    %c0_i32 = arith.constant 0 : i32
    %c0_i32_0 = arith.constant 0 : i32
    return %arg0, %c0_i32 : i32, i32
  }
}

</mosaic_0001>

<bundles_post_ra>
// kernel: adaptive_instance_norm_2d.1
= control target key start
LH: loop header
LB: loop body
LE: loop exit
PB: predicated region body
PF: predicated region fallthrough
CT: control target
= control target key end

     0   :  { %v61_v6 = vmov 0   ;;  %s100_s0 = inlined_call_operand.vmem [shape: f32[8,256], index: 0, kind: input, shape index: {}]   ;;  %s101_s1 = inlined_call_operand.vmem [shape: f32[8,1], index: 1, kind: input, shape index: {}]   ;;  %s102_s2 = inlined_call_operand.vmem [shape: f32[8,1], index: 2, kind: input, shape index: {}]   ;;  %s103_s3 = inlined_call_operand.vmem [shape: f32[8,256], index: 3, kind: output, shape index: {}]  }
   0x1   :  { %v14_v0 = vld [vmem:[%s100_s0] sm:$0xff]  ;;  %v15_v1 = vld [vmem:[%s100_s0 + $0x8] sm:$0xff]  ;;  %57 = vset.pattern.permute.xlu1 %v61_v6  ;;  %58 = vset.pattern.permute.xlu0 %v61_v6 }
   0x2   :  { %v16_v2 = vadd.f32 %v15_v1, %v14_v0  ;;  %v20_v3 = vmul.f32 %v14_v0, %v14_v0  ;;  %v21_v4 = vmul.f32 %v15_v1, %v15_v1  ;;  %v31_v15 = vld [vmem:[%s101_s1] sm:$0xff] }
   0x3   :  { %v33_v18 = vld [vmem:[%s102_s2] sm:$0xff] }
   0x4   :  { %17 = vadd.xlane.f32.xlu0 %v16_v2  ;;  %v22_v5 = vadd.f32 %v21_v4, %v20_v3 }
   0x8   :  { %23 = vadd.xlane.f32.xlu0 %v22_v5 }
  0x8d   :  { %v18_v7 = vpop.xlane.xlu0 %17 }
  0x8e   :  { %v19_v8 = vmul.f32 0.00390625, %v18_v7 }
  0x90   :  { %v26_v10 = vmul.f32 %v19_v8, %v19_v8 }
  0x91   :  { %v24_v9 = vpop.xlane.xlu0 %23 }
  0x92   :  { %v25_v11 = vmul.f32 0.00390625, %v24_v9 }
  0x94   :  { %v27_v12 = vsub.f32 %v25_v11, %v26_v10 }
  0x96   :  { %v28_v13 = vmax.f32 %v27_v12, 0.0 }
  0x98   :  { %v29_v14 = vadd.f32 1e-05, %v28_v13 }
  0x9a   :  { %59 = vrsqrt.f32 %v29_v14 }
  0xa7   :  { %v60_v16 = vpop.eup %59 }
  0xa8   :  { %v32_v17 = vmul.f32 %v60_v16, %v31_v15 }
  0xaa   :  { %38 = vperm.xlu1 %57, %v32_v17   ;;  %v34_v19 = vmul.f32 %v32_v17, %v19_v8 }
  0xac   :  { %v35_v20 = vsub.f32 %v33_v18, %v34_v19 }
  0xae   :  { %45 = vperm.xlu1 %57, %v35_v20  }
 0x125   :  { %v39_v21 = vpop.permute.xlu1 %38 }
 0x126   :  { %v41_v22 = vmul.f32 %v39_v21, %v14_v0  ;;  %v42_v23 = vmul.f32 %v39_v21, %v15_v1 }
 0x129   :  { %v46_v24 = vpop.permute.xlu1 %45 }
 0x12a   :  { %v48_v25 = vadd.f32 %v46_v24, %v41_v22  ;;  %v49_v26 = vadd.f32 %v46_v24, %v42_v23 }
 0x12c   :  { %50 = vst [vmem:[%s103_s3] sm:$0xff] %v48_v25  ;;  %51 = vst [vmem:[%s103_s3 + $0x8] sm:$0xff] %v49_v26 }

</bundles_post_ra>
